<compile_context>
chip_gen: v7x
topology: tpu7x:2x2x1
jax: 0.10.0
libtpu: 0.0.40
codegen_flags: <defaults>
</compile_context>

<pallas_src>
import math
from functools import partial

import jax
import jax.numpy as jnp
from jax.experimental import pallas as pl
from jax.experimental.pallas import tpu as pltpu


# ----------------------------------------------------------------------------
# Kernels: flat 2-D streaming add (+ optional fused dropout multiply).
# x_ref / o_ref (and mask_ref): (ts, B*D) tiles; pe_ref: (ts, D) tile.
# ----------------------------------------------------------------------------
def _pos_enc_kernel(x_ref, pe_ref, o_ref, *, batch):
    pe_b = jnp.tile(pe_ref[...], (1, batch))          # lane-wise broadcast over batch
    o_ref[...] = (x_ref[...] + pe_b).astype(o_ref.dtype)


def _pos_enc_dropout_kernel(x_ref, pe_ref, mask_ref, o_ref, *, batch):
    pe_b = jnp.tile(pe_ref[...], (1, batch))
    o_ref[...] = ((x_ref[...] + pe_b) * mask_ref[...]).astype(o_ref.dtype)


# ----------------------------------------------------------------------------
# Positional-encoding table, identical to the PyTorch __init__ (max_len, d_model).
# ----------------------------------------------------------------------------
def build_pe(max_len, d_model):
    position = jnp.arange(max_len, dtype=jnp.float32)[:, None]
    div_term = jnp.exp(jnp.arange(0, d_model, 2, dtype=jnp.float32)
                       * (-math.log(10000.0) / d_model))
    pe = jnp.zeros((max_len, d_model), jnp.float32)
    pe = pe.at[:, 0::2].set(jnp.sin(position * div_term))
    pe = pe.at[:, 1::2].set(jnp.cos(position * div_term))
    return pe


def _choose_row_tile(S, row_bytes, itemsize, budget_bytes=4 << 20):
    """Row tile: <= ~4 MiB per buffer, rounded to the dtype's sublane pack,
    with >=2 grid steps when S is large (keeps both v7x TensorCores busy)."""
    pack = 8 * max(1, 4 // max(itemsize, 1))            # 8 f32, 16 bf16, 32 int8
    ts = (budget_bytes // max(row_bytes, 1)) // pack * pack
    ts = max(ts, pack)
    if ts >= S:
        if S >= 2 * pack:
            half = -(-S // 2)                            # ceil(S/2)
            ts = -(-half // pack) * pack                 # round up to pack multiple
        else:
            ts = S                                       # single tiny block (full-dim block is legal)
    return ts


# ----------------------------------------------------------------------------
# Wrapper
# ----------------------------------------------------------------------------
def positional_encoding(x, pe, *, p=0.1, training=False, rng=None):
    """x: (S, B, D).  pe: (max_len, D) with max_len >= S.  Returns (S, B, D)."""
    S, B, D = x.shape
    assert pe.shape[0] >= S and pe.shape[1] == D
    BD = B * D
    itemsize = x.dtype.itemsize

    x2d = x.reshape(S, BD)                 # free (row-major contiguous), lane-dense
    pe_s = pe[:S].astype(x.dtype)          # only the rows actually consumed

    ts = _choose_row_tile(S, BD * itemsize, itemsize)
    grid = (pl.cdiv(S, ts),)

    row_spec = pl.BlockSpec((ts, BD), lambda i: (i, 0))
    pe_spec = pl.BlockSpec((ts, D), lambda i: (i, 0))

    use_dropout = bool(training) and float(p) > 0.0
    if use_dropout:
        if rng is None:
            rng = jax.random.PRNGKey(0)
        # TODO(synk): dropout mask is drawn with jax.random, so it cannot match
        # torch's RNG stream bit-for-bit (drop prob. p and 1/(1-p) scaling do match).
        keep = jax.random.bernoulli(rng, 1.0 - float(p), (S, BD))
        mask = keep.astype(x.dtype) * jnp.asarray(1.0 / (1.0 - float(p)), x.dtype)
        kernel = partial(_pos_enc_dropout_kernel, batch=B)
        operands = (x2d, pe_s, mask)
        in_specs = [row_spec, pe_spec, row_spec]
    else:
        kernel = partial(_pos_enc_kernel, batch=B)
        operands = (x2d, pe_s)
        in_specs = [row_spec, pe_spec]

    # Resident VMEM (double-buffered): x + out (+ mask) row tiles, plus pe tiles.
    n_streams = 3 if use_dropout else 2
    resident = 2 * (n_streams * ts * BD * itemsize + ts * D * itemsize)
    vmem_limit = int(min(max(resident * 3 // 2, 16 << 20), 40 << 20))

    out2d = pl.pallas_call(
        kernel,
        out_shape=jax.ShapeDtypeStruct((S, BD), x.dtype),
        grid=grid,
        in_specs=in_specs,
        out_specs=row_spec,
        input_output_aliases={0: 0},       # x block read before its out block is written
        compiler_params=pltpu.CompilerParams(
            dimension_semantics=("parallel",),
            vmem_limit_bytes=vmem_limit),
    )(*operands)

    return out2d.reshape(S, B, D)


if __name__ == "__main__":
    d_model = 32
    max_len = 250
    seq_len = 8
    batch = 2

    key = jax.random.PRNGKey(0)
    kx, kd = jax.random.split(key)
    x = jax.random.normal(kx, (seq_len, batch, d_model), dtype=jnp.float32)

    pe = build_pe(max_len, d_model)

    # Eval-mode forward (dropout is identity) -> deterministic, check vs reference.
    out = positional_encoding(x, pe, p=0.1, training=False)
    out = jax.block_until_ready(out)

    ref = x + pe[:seq_len][:, None, :]
    assert out.shape == (seq_len, batch, d_model)
    assert jnp.allclose(out, ref, atol=1e-6, rtol=1e-6), "mismatch vs reference"

    # Training-mode forward: exercises the fused-dropout path.
    out_tr = positional_encoding(x, pe, p=0.1, training=True, rng=kd)
    out_tr = jax.block_until_ready(out_tr)
    assert out_tr.shape == (seq_len, batch, d_model)
    assert bool(jnp.all(jnp.isfinite(out_tr)))
    # Survivors are (x+pe)/(1-p); dropped entries are exactly zero.
    scaled_ref = ref / (1.0 - 0.1)
    match = jnp.isclose(out_tr, scaled_ref, atol=1e-5) | (out_tr == 0.0)
    assert bool(jnp.all(match))

    print("KERNEL_OK")
</pallas_src>

<mosaic_0001>
module attributes {stable_mosaic.version = 11 : i64} {
  func.func @_pos_enc_kernel(%arg0: i32, %arg1: memref<8x64xf32, #tpu.memory_space<vmem>>, %arg2: memref<8x32xf32, #tpu.memory_space<vmem>>, %arg3: memref<8x64xf32, #tpu.memory_space<vmem>>) attributes {dimension_semantics = [#tpu.dimension_semantics<parallel>], iteration_bounds = array<i64: 1>, scalar_prefetch = 0 : i64, scratch_operands = 0 : i64, tpu.core_type = #tpu.core_type<tc>, window_params = [{transform_indices = @transform_0, window_bounds = array<i64: 8, 64>}, {transform_indices = @transform_1, window_bounds = array<i64: 8, 32>}, {transform_indices = @transform_2, window_bounds = array<i64: 8, 64>}]} {
    %c0 = arith.constant 0 : index
    %c0_0 = arith.constant 0 : index
    %0 = vector.load %arg2[%c0, %c0_0] : memref<8x32xf32, #tpu.memory_space<vmem>>, vector<8x32xf32>
    %1 = tpu.concatenate %0, %0 in 1 : vector<8x32xf32>, vector<8x32xf32> -> vector<8x64xf32>
    %c0_1 = arith.constant 0 : index
    %c0_2 = arith.constant 0 : index
    %2 = vector.load %arg1[%c0_1, %c0_2] : memref<8x64xf32, #tpu.memory_space<vmem>>, vector<8x64xf32>
    %3 = arith.addf %2, %1 : vector<8x64xf32>
    %c0_3 = arith.constant 0 : index
    %c0_4 = arith.constant 0 : index
    %4 = vector.load %arg3[%c0_3, %c0_4] : memref<8x64xf32, #tpu.memory_space<vmem>>, vector<8x64xf32>
    tpu.vector_store %arg3[%c0_3, %c0_4], %3 {strides = array<i32>} : memref<8x64xf32, #tpu.memory_space<vmem>>, vector<8x64xf32>,
    return
  }
  func.func @transform_0(%arg0: i32) -> (i32, i32) {
    %c0_i32 = arith.constant 0 : i32
    %c0_i32_0 = arith.constant 0 : i32
    return %arg0, %c0_i32 : i32, i32
  }
  func.func @transform_1(%arg0: i32) -> (i32, i32) {
    %c0_i32 = arith.constant 0 : i32
    %c0_i32_0 = arith.constant 0 : i32
    return %arg0, %c0_i32 : i32, i32
  }
  func.func @transform_2(%arg0: i32) -> (i32, i32) {
    %c0_i32 = arith.constant 0 : i32
    %c0_i32_0 = arith.constant 0 : i32
    return %arg0, %c0_i32 : i32, i32
  }
}

</mosaic_0001>

<bundles_post_ra>
// kernel: tpu_custom_call.1
= control target key start
LH: loop header
LB: loop body
LE: loop exit
PB: predicated region body
PF: predicated region fallthrough
CT: control target
= control target key end

     0   :  { %7 = vsyncpa [#allocation3], 0  ;;  %s146_s0 = inlined_call_operand.hbm [shape: f32[8,64], index: 0, kind: input, shape index: {}, may-alias: {0,2}]   ;;  %s147_s1 = inlined_call_operand.vmem [shape: f32[8,32], index: 1, kind: input, shape index: {}]   ;;  %s148_s2 = inlined_call_operand.hbm [shape: f32[8,64], index: 2, kind: output, shape index: {}, may-alias: {0,2}]  }
   0x1   :  { %8 = vsyncpa [#allocation4], 0  ;;  %s101_s9 = smov [#allocation2]   ;;  %s53_s13 = scalar_lea.hbm %s146_s0, 128 }
   0x2   :  { %s15_s10 = sshll.u32 %s101_s9, 4  ;;  %p54_p0 = scmp.ne.s32.totalorder %s146_s0, %s53_s13  ;;  %s16_s10 = int_to_ptr.vmem [resolvable:$true] %s15_s10 }
   0x3   :  { %p57_p1 = scmp.lt.u32.totalorder %s53_s13, %s146_s0 }
   0x5   :  { %p59_p2 = pnand %p57_p1, %p54_p0 }
   0x7   :  { %62 = shalt.err (!%p59_p2)
}
   0x8   :  { %s63_s18 = scalar_lea.vmem %s16_s10, 128  ;;  %p68_p4 = scmp.lt.s32.totalorder %s16_s10, %s16_s10 }
   0x9   :  { %p64_p3 = scmp.ne.s32.totalorder %s16_s10, %s63_s18  ;;  %p69_p5 = scmp.lt.s32.totalorder %s63_s18, %s63_s18 }
   0xb   :  { %p70_p6 = por %p69_p5, %p68_p4 }
   0xd   :  { %p71_p7 = pnand %p70_p6, %p64_p3 }
   0xf   :  { %74 = shalt.err (!%p71_p7)
}
  0x10   :  { %18 = dma.hbm_to_vmem [thread:$0]  %s146_s0, 128, %s16_s10, [#allocation3]  }
  0x11   :  { %97 = dma.done.wait [#allocation3], 128  }
  0x12   :  { %98 = vsyncadd [#allocation3], 4294967168  ;;  %v24_v0 = vld [vmem:[%s147_s1] sm:$0xff]  ;;  %s102_s23 = smov 32   ;;  %vm29_vm0 = vcmask 261120   ;;  %s103_s24 = smov [#allocation5]  }
  0x13   :  { %26 = vrot.lane.b32.xlu0 %v24_v0, %s102_s23  ;;  %v31_v1 = vld [vmem:[#allocation2] sm:$0xff]  ;;  %s41_s25 = sshll.u32 %s103_s24, 4  ;;  %vm33_vm1 = vcmask 523264   ;;  %s42_s25 = int_to_ptr.vmem [resolvable:$true] %s41_s25 }
  0x14   :  { %s75_s26 = scalar_lea.vmem %s42_s25, 128  ;;  %p80_p9 = scmp.lt.s32.totalorder %s42_s25, %s42_s25 }
  0x15   :  { %p76_p8 = scmp.ne.s32.totalorder %s42_s25, %s75_s26  ;;  %p81_p10 = scmp.lt.s32.totalorder %s75_s26, %s75_s26 }
  0x17   :  { %p82_p11 = por %p81_p10, %p80_p9 }
  0x19   :  { %p83_p12 = pnand %p82_p11, %p76_p8 }
  0x85   :  { %v27_v2 = vpop.permute.xlu0 %26 }
  0x86   :  { %v30_v3 = vsel %vm29_vm0, %v24_v0, %v27_v2 }
  0x87   :  { %v32_v4 = vadd.f32 %v31_v1, %v30_v3 }
  0x89   :  { %34 = vst.msk [vmem:[#allocation5] sm:$0xff] %vm33_vm1, %v32_v4 }
  0x8a   :  { %86 = shalt.err (!%p83_p12)
}
  0x8b   :  { %s87_s27 = scalar_lea.hbm %s148_s2, 128 }
  0x8c   :  { %p88_p13 = scmp.ne.s32.totalorder %s148_s2, %s87_s27  ;;  %p91_p0 = scmp.lt.u32.totalorder %s87_s27, %s148_s2 }
  0x8e   :  { %p93_p1 = pnand %p91_p0, %p88_p13 }
  0x90   :  { %96 = shalt.err (!%p93_p1)
}
  0x91   :  { %44 = dma.vmem_to_hbm [thread:$0]  %s42_s25, 128, %s148_s2, [#allocation4]  }
  0x92   :  { %99 = dma.done.wait [#allocation4], 128  }
  0x93   :  { %100 = vsyncadd [#allocation4], 4294967168 }
  0x94   :  { %48 = vsyncpa [#allocation3], 1 }
  0x95   :  { %49 = vsyncpa [#allocation4], 1 }

</bundles_post_ra>
